<compile_context>
chip_gen: v7x
topology: tpu7x:2x2x1
jax: 0.10.0
libtpu: 0.0.40
codegen_flags: <defaults>
</compile_context>

<pallas_src>
import functools

import jax
import jax.numpy as jnp
from jax.experimental import pallas as pl
from jax.experimental.pallas import tpu as pltpu


def _round_up(x, m):
    return (x + m - 1) // m * m


_VMEM_LIMIT = 48 * 1024 * 1024
# Pinned-XW footprint guard (double-buffered bf16 operand). Above this budget
# fall back to re-streaming XW per K tile (only matters for very large graphs).
_PIN_XW_BYTE_BUDGET = 24 * 1024 * 1024


# ----------------------------------------------------------------------------
# Kernel 1: per-view feature transform   XW[v] = X[v] @ W   (bf16 in, bf16 out)
# ----------------------------------------------------------------------------
def _xw_kernel(x_ref, w_ref, o_ref):
    o_ref[...] = jnp.dot(
        x_ref[...], w_ref[...], preferred_element_type=jnp.float32
    ).astype(o_ref.dtype)


def feature_transform(x_stack, w_bf16, *, tm=128):
    v, n, f_in = x_stack.shape
    f_out = w_bf16.shape[1]
    cost = pl.CostEstimate(
        flops=2 * v * n * f_in * f_out,
        transcendentals=0,
        bytes_accessed=int(x_stack.size * x_stack.dtype.itemsize
                           + w_bf16.size * 2 + v * n * f_out * 2),
    )
    return pl.pallas_call(
        _xw_kernel,
        out_shape=jax.ShapeDtypeStruct((v, n, f_out), jnp.bfloat16),
        grid=(v, n // tm),
        in_specs=[
            pl.BlockSpec((None, tm, f_in), lambda vi, i: (vi, i, 0)),
            pl.BlockSpec((f_in, f_out), lambda vi, i: (0, 0)),
        ],
        out_specs=pl.BlockSpec((None, tm, f_out), lambda vi, i: (vi, i, 0)),
        compiler_params=pltpu.CompilerParams(
            dimension_semantics=("parallel", "parallel"),
            vmem_limit_bytes=_VMEM_LIMIT,
        ),
        cost_estimate=cost,
    )(x_stack, w_bf16)


# ----------------------------------------------------------------------------
# Kernel 2: aggregation   H[v] = relu( A[v] @ XW[v] + b )
# Row/K-tiled; XW pinned VMEM-resident across the K axis (block index only
# changes per view). f32 accumulation; bias+relu only in the K==last finalize.
# The accumulator is the K-resident output block itself when the output is
# f32 (final layer), otherwise a small f32 VMEM scratch (bf16 intermediates).
# ----------------------------------------------------------------------------
def _agg_kernel(a_ref, xw_ref, b_ref, o_ref, *scratch, apply_relu, tk, pinned):
    acc_ref = scratch[0] if scratch else o_ref
    k = pl.program_id(2)

    @pl.when(k == 0)
    def _():
        acc_ref[...] = jnp.zeros_like(acc_ref)

    if pinned:
        kk = pl.multiple_of(k * tk, tk)
        xw_tile = xw_ref[pl.ds(kk, tk), :]
    else:
        xw_tile = xw_ref[...]
    acc_ref[...] += jnp.dot(a_ref[...], xw_tile,
                            preferred_element_type=jnp.float32)

    @pl.when(k == pl.num_programs(2) - 1)
    def _():
        h = acc_ref[...] + b_ref[...]
        if apply_relu:
            h = jnp.maximum(h, 0.0)
        o_ref[...] = h.astype(o_ref.dtype)


def aggregate(a_stack, xw_stack, b, *, apply_relu, out_dtype, tm=128, tk=128,
              pin_xw=True):
    v, n, _ = a_stack.shape
    f_out = xw_stack.shape[2]
    out_itemsize = jnp.dtype(out_dtype).itemsize

    if pin_xw:
        # XW resident in VMEM across the whole K (and row-tile) axis: only
        # re-DMA'd when the view index changes.
        xw_spec = pl.BlockSpec((None, n, f_out), lambda vi, i, k: (vi, 0, 0))
        xw_bytes = v * n * f_out * 2
    else:
        xw_spec = pl.BlockSpec((None, tk, f_out), lambda vi, i, k: (vi, k, 0))
        xw_bytes = v * (n // tm) * n * f_out * 2

    use_scratch = jnp.dtype(out_dtype) != jnp.dtype(jnp.float32)
    scratch_shapes = [pltpu.VMEM((tm, f_out), jnp.float32)] if use_scratch else []

    kernel = functools.partial(_agg_kernel, apply_relu=apply_relu, tk=tk,
                               pinned=pin_xw)
    cost = pl.CostEstimate(
        flops=2 * v * n * n * f_out,
        transcendentals=0,
        bytes_accessed=int(v * n * n * 2 + xw_bytes
                           + v * n * f_out * out_itemsize + f_out * 4),
    )
    return pl.pallas_call(
        kernel,
        out_shape=jax.ShapeDtypeStruct((v, n, f_out), out_dtype),
        grid=(v, n // tm, n // tk),
        in_specs=[
            pl.BlockSpec((None, tm, tk), lambda vi, i, k: (vi, i, k)),
            xw_spec,
            pl.BlockSpec((1, f_out), lambda vi, i, k: (0, 0)),
        ],
        out_specs=pl.BlockSpec((None, tm, f_out), lambda vi, i, k: (vi, i, 0)),
        scratch_shapes=scratch_shapes,
        compiler_params=pltpu.CompilerParams(
            # K (reduction) axis must stay last / "arbitrary" for the resident
            # accumulator to be correct.
            dimension_semantics=("parallel", "parallel", "arbitrary"),
            vmem_limit_bytes=_VMEM_LIMIT,
        ),
        cost_estimate=cost,
    )(a_stack, xw_stack, b)


# ----------------------------------------------------------------------------
# Kernel 3: projector head   p = z @ Wp + bp   (row-tiled linear)
# ----------------------------------------------------------------------------
def _linear_kernel(x_ref, w_ref, b_ref, o_ref):
    o_ref[...] = (
        jnp.dot(x_ref[...].astype(jnp.bfloat16), w_ref[...],
                preferred_element_type=jnp.float32)
        + b_ref[...]
    ).astype(o_ref.dtype)


def linear(z, w, b, *, tm=128):
    n, f_in = z.shape
    f_out = w.shape[1]
    n_pad = _round_up(n, tm)
    z_p = jnp.pad(z, ((0, n_pad - n), (0, 0))) if n_pad != n else z
    out = pl.pallas_call(
        _linear_kernel,
        out_shape=jax.ShapeDtypeStruct((n_pad, f_out), jnp.float32),
        grid=(n_pad // tm,),
        in_specs=[
            pl.BlockSpec((tm, f_in), lambda i: (i, 0)),
            pl.BlockSpec((f_in, f_out), lambda i: (0, 0)),
            pl.BlockSpec((1, f_out), lambda i: (0, 0)),
        ],
        out_specs=pl.BlockSpec((tm, f_out), lambda i: (i, 0)),
        compiler_params=pltpu.CompilerParams(
            dimension_semantics=("parallel",),
            vmem_limit_bytes=_VMEM_LIMIT,
        ),
        cost_estimate=pl.CostEstimate(
            flops=2 * n_pad * f_in * f_out,
            transcendentals=0,
            bytes_accessed=int(n_pad * f_in * 4 + f_in * f_out * 2
                               + n_pad * f_out * 4),
        ),
    )(z_p, w.astype(jnp.bfloat16), b)
    return out[:n]


# ----------------------------------------------------------------------------
# Plain-JAX glue: adjacency normalization, augmentations, parameter init
# ----------------------------------------------------------------------------
def build_norm_adj(edge_index, edge_weight, num_nodes):
    """Unpadded f32 GCNConv-style normalized adjacency (reference only)."""
    src, dst = edge_index[0], edge_index[1]
    if edge_weight is None:
        edge_weight = jnp.ones((edge_index.shape[1],), jnp.float32)
    a = jnp.zeros((num_nodes, num_nodes), jnp.float32).at[dst, src].add(edge_weight)
    a = a + jnp.eye(num_nodes, dtype=jnp.float32)
    deg = a.sum(axis=1)
    dinv = jax.lax.rsqrt(jnp.maximum(deg, 1e-12))
    return a * dinv[:, None] * dinv[None, :]


def _build_norm_adj_padded(edge_index, edge_weight, num_nodes, n_pad):
    """D^-1/2 (A + I) D^-1/2 written straight into the padded shape, cast once
    to bf16. Padded rows/columns are exactly zero (deg=0 rows have zero A), so
    padded nodes can never contribute to real rows in the aggregate kernel."""
    src, dst = edge_index[0], edge_index[1]
    a = jnp.zeros((n_pad, n_pad), jnp.float32).at[dst, src].add(edge_weight)
    diag = jnp.arange(num_nodes)
    a = a.at[diag, diag].add(1.0)
    deg = a.sum(axis=1)
    dinv = jax.lax.rsqrt(jnp.maximum(deg, 1e-12))
    return (a * dinv[:, None] * dinv[None, :]).astype(jnp.bfloat16)


def grace_augment(key, x, edge_index, edge_weight, pe=0.3, pf=0.3):
    """GRACE view: EdgeRemoving(pe) + FeatureMasking(pf), static shapes."""
    k_edge, k_feat = jax.random.split(key)
    keep_edge = jax.random.bernoulli(k_edge, 1.0 - pe, (edge_index.shape[1],))
    ew = edge_weight * keep_edge.astype(jnp.float32)   # removed edge == weight 0
    keep_feat = jax.random.bernoulli(k_feat, 1.0 - pf, (x.shape[1],))
    x_aug = x * keep_feat.astype(x.dtype)[None, :]
    return x_aug, edge_index, ew


def init_params(key, in_dim, z_dim, nm_layers):
    params = {"layers": []}
    dims = [in_dim] + [z_dim] * nm_layers
    for li in range(nm_layers):
        key, kw = jax.random.split(key)
        fan_in, fan_out = dims[li], dims[li + 1]
        scale = jnp.sqrt(2.0 / (fan_in + fan_out))
        w = jax.random.normal(kw, (fan_in, fan_out), jnp.float32) * scale
        b = jnp.zeros((1, fan_out), jnp.float32)
        params["layers"].append((w, b))
    # Projector is a single nn.Linear(z_dim, z_dim), as in the reference module.
    key, kp = jax.random.split(key)
    scale = jnp.sqrt(2.0 / (2 * z_dim))
    params["proj_w"] = jax.random.normal(kp, (z_dim, z_dim), jnp.float32) * scale
    params["proj_b"] = jnp.zeros((1, z_dim), jnp.float32)
    return params


def _pick_tiles(num_nodes):
    """tm=256 fills the 256x256 MXUs on v6e/v7x; v5e (4x128^2) is native at
    128. tk grows once XW is pinned (only the A tile moves per K step)."""
    try:
        kind = jax.devices()[0].device_kind.lower()
    except Exception:  # pragma: no cover - defensive
        kind = ""
    tm = 128 if any(t in kind for t in ("v2", "v3", "v4", "v5")) else 256
    if num_nodes <= tm:
        tm = 128
    n_pad = _round_up(num_nodes, tm)
    tk = tm
    for cand in (2048, 1024, 512, 256):
        if cand >= tm and n_pad % cand == 0:
            tk = cand
            break
    return tm, tk, n_pad


# ----------------------------------------------------------------------------
# Module forward
# ----------------------------------------------------------------------------
def encoder_forward_batched(params, a_stack_bf16, x_stack_bf16, *, tm, tk,
                            pin_xw):
    h = x_stack_bf16
    n_layers = len(params["layers"])
    for li, (w, b) in enumerate(params["layers"]):
        xw = feature_transform(h, w.astype(jnp.bfloat16), tm=tm)
        # PyGCL's GRACE GCN encoder applies the activation after EVERY conv
        # layer (including the last). Intermediate H is bf16 (it is re-cast to
        # bf16 for the next matmul anyway); final embeddings stay f32.
        out_dtype = jnp.float32 if li == n_layers - 1 else jnp.bfloat16
        h = aggregate(a_stack_bf16, xw, b, apply_relu=True,
                      out_dtype=out_dtype, tm=tm, tk=tk, pin_xw=pin_xw)
    return h


def contrast_reprsn_forward(params, aug_key, x, edge_index, edge_weight=None):
    n = x.shape[0]
    num_edges = edge_index.shape[1]
    ew0 = (jnp.ones((num_edges,), jnp.float32)
           if edge_weight is None else edge_weight.astype(jnp.float32))

    # Augmentor (GRACE branch): two independently augmented views.
    k1, k2 = jax.random.split(aug_key)
    x1, _, ew1 = grace_augment(k1, x, edge_index, ew0)
    x2, _, ew2 = grace_augment(k2, x, edge_index, ew0)

    tm, tk, n_pad = _pick_tiles(n)
    pad_n = n_pad - n

    # All three views share edge_index (GRACE only zeroes edge weights): build
    # the padded bf16 adjacency stack in one vmapped scatter + normalize.
    ew_stack = jnp.stack([ew0, ew1, ew2])
    a_stack = jax.vmap(
        lambda ew: _build_norm_adj_padded(edge_index, ew, n, n_pad)
    )(ew_stack)

    x_stack = jnp.stack([x, x1, x2]).astype(jnp.bfloat16)
    if pad_n:
        x_stack = jnp.pad(x_stack, ((0, 0), (0, pad_n), (0, 0)))

    f_out = params["layers"][0][0].shape[1]
    pin_xw = (2 * n_pad * f_out * 2) <= _PIN_XW_BYTE_BUDGET

    h = encoder_forward_batched(params, a_stack, x_stack, tm=tm, tk=tk,
                                pin_xw=pin_xw)
    h = h[:, :n, :]
    return h[0], h[1], h[2]


def project(params, z):
    return linear(z, params["proj_w"], params["proj_b"])


# Pure-JAX reference (same bf16 operand casts) for a sanity check.
def _encoder_ref(params, a_f32, x):
    a_bf = a_f32.astype(jnp.bfloat16)
    h = x.astype(jnp.float32)
    for (w, b) in params["layers"]:
        xw = jnp.dot(h.astype(jnp.bfloat16), w.astype(jnp.bfloat16),
                     preferred_element_type=jnp.float32).astype(jnp.bfloat16)
        h = jnp.dot(a_bf, xw, preferred_element_type=jnp.float32) + b
        h = jnp.maximum(h, 0.0)
    return h


# ----------------------------------------------------------------------------
if __name__ == "__main__":
    config = {
        "augtype": "GRACE",
        "encoder": {"in_dim": 128, "z_dim": 128, "nm_layers": 2},
    }

    root = jax.random.PRNGKey(0)
    k_param, k_x, k_edge, k_aug = jax.random.split(root, 4)

    num_nodes = 200      # pads to 256
    num_edges = 600
    in_dim = config["encoder"]["in_dim"]

    params = init_params(
        k_param, in_dim, config["encoder"]["z_dim"], config["encoder"]["nm_layers"]
    )
    x = jax.random.normal(k_x, (num_nodes, in_dim), jnp.float32)
    edge_index = jax.random.randint(k_edge, (2, num_edges), 0, num_nodes, jnp.int32)

    fwd = jax.jit(contrast_reprsn_forward)
    z, z1, z2 = fwd(params, k_aug, x, edge_index)
    p = project(params, z)  # exercise the projector head as well

    jax.block_until_ready((z, z1, z2, p))
    assert z.shape == (num_nodes, config["encoder"]["z_dim"])
    assert z1.shape == z.shape and z2.shape == z.shape and p.shape == z.shape

    # Numerical sanity check of the un-augmented view against plain JAX.
    z_ref = _encoder_ref(params, build_norm_adj(edge_index, None, num_nodes), x)
    max_err = float(jnp.max(jnp.abs(z - z_ref)))
    assert max_err < 5e-2, f"max abs error {max_err}"

    print("KERNEL_OK")
</pallas_src>

<mosaic_0001>
module attributes {stable_mosaic.version = 11 : i64} {
  func.func @_xw_kernel(%arg0: i32, %arg1: i32, %arg2: memref<1x128x128xbf16, #tpu.memory_space<vmem>>, %arg3: memref<128x128xbf16, #tpu.memory_space<vmem>>, %arg4: memref<1x128x128xbf16, #tpu.memory_space<vmem>>) attributes {dimension_semantics = [#tpu.dimension_semantics<parallel>, #tpu.dimension_semantics<parallel>], iteration_bounds = array<i64: 3, 2>, scalar_prefetch = 0 : i64, scratch_operands = 0 : i64, tpu.core_type = #tpu.core_type<tc>, window_params = [{transform_indices = @transform_0, window_bounds = array<i64: 1, 128, 128>}, {pipeline_mode = #tpu.pipeline_mode<synchronous>, transform_indices = @transform_1, window_bounds = array<i64: 128, 128>}, {transform_indices = @transform_2, window_bounds = array<i64: 1, 128, 128>}]} {
    %c0 = arith.constant 0 : index
    %c0_0 = arith.constant 0 : index
    %c0_1 = arith.constant 0 : index
    %0 = vector.load %arg2[%c0, %c0_0, %c0_1] : memref<1x128x128xbf16, #tpu.memory_space<vmem>>, vector<1x128x128xbf16>
    %1 = vector.shape_cast %0 : vector<1x128x128xbf16> to vector<128x128xbf16>
    %c0_2 = arith.constant 0 : index
    %c0_3 = arith.constant 0 : index
    %2 = vector.load %arg3[%c0_2, %c0_3] : memref<128x128xbf16, #tpu.memory_space<vmem>>, vector<128x128xbf16>
    %cst = arith.constant dense<0.000000e+00> : vector<128x128xf32>
    %3 = tpu.matmul %1, %2, %cst {dimension_numbers = #tpu.dot_dimension_numbers<[1], [0], [0], [1], [0, 0, 1, 1], [], []>} : vector<128x128xbf16>, vector<128x128xbf16>, vector<128x128xf32> -> vector<128x128xf32>
    %4 = arith.truncf %3 : vector<128x128xf32> to vector<128x128xbf16>
    %c0_4 = arith.constant 0 : index
    %c0_5 = arith.constant 0 : index
    %c0_6 = arith.constant 0 : index
    %5 = vector.load %arg4[%c0_4, %c0_5, %c0_6] : memref<1x128x128xbf16, #tpu.memory_space<vmem>>, vector<1x128x128xbf16>
    %6 = vector.shape_cast %5 : vector<1x128x128xbf16> to vector<128x128xbf16>
    %7 = vector.shape_cast %4 : vector<128x128xbf16> to vector<1x128x128xbf16>
    tpu.vector_store %arg4[%c0_4, %c0_5, %c0_6], %7 {strides = array<i32>} : memref<1x128x128xbf16, #tpu.memory_space<vmem>>, vector<1x128x128xbf16>,
    return
  }
  func.func @transform_0(%arg0: i32, %arg1: i32) -> (i32, i32, i32) {
    %c0_i32 = arith.constant 0 : i32
    %c0_i32_0 = arith.constant 0 : i32
    return %arg0, %arg1, %c0_i32 : i32, i32, i32
  }
  func.func @transform_1(%arg0: i32, %arg1: i32) -> (i32, i32) {
    %c0_i32 = arith.constant 0 : i32
    %c0_i32_0 = arith.constant 0 : i32
    %c0_i32_1 = arith.constant 0 : i32
    return %c0_i32, %c0_i32_0 : i32, i32
  }
  func.func @transform_2(%arg0: i32, %arg1: i32) -> (i32, i32, i32) {
    %c0_i32 = arith.constant 0 : i32
    %c0_i32_0 = arith.constant 0 : i32
    return %arg0, %arg1, %c0_i32 : i32, i32, i32
  }
}

module attributes {stable_mosaic.version = 11 : i64} {
  func.func @_agg_kernel(%arg0: i32, %arg1: i32, %arg2: i32, %arg3: memref<1x128x256xbf16, #tpu.memory_space<vmem>>, %arg4: memref<1x256x128xbf16, #tpu.memory_space<vmem>>, %arg5: memref<1x128xf32, #tpu.memory_space<vmem>>, %arg6: memref<1x128x128xf32, #tpu.memory_space<vmem>>) attributes {dimension_semantics = [#tpu.dimension_semantics<parallel>, #tpu.dimension_semantics<parallel>, #tpu.dimension_semantics<arbitrary>], iteration_bounds = array<i64: 3, 2, 1>, scalar_prefetch = 0 : i64, scratch_operands = 0 : i64, tpu.core_type = #tpu.core_type<tc>, window_params = [{transform_indices = @transform_0, window_bounds = array<i64: 1, 128, 256>}, {transform_indices = @transform_1, window_bounds = array<i64: 1, 256, 128>}, {pipeline_mode = #tpu.pipeline_mode<synchronous>, transform_indices = @transform_2, window_bounds = array<i64: 1, 128>}, {transform_indices = @transform_3, window_bounds = array<i64: 1, 128, 128>}]} {
    %c0_i32 = arith.constant 0 : i32
    %0 = arith.cmpi eq, %arg2, %c0_i32 : i32
    %1 = arith.extui %0 : i1 to i32
    %c0_i32_0 = arith.constant 0 : i32
    %2 = arith.cmpi ne, %1, %c0_i32_0 : i32
    scf.if %2 {
      %cst_13 = arith.constant 0.000000e+00 : f32
      %20 = vector.broadcast %cst_13 : f32 to vector<128x128xf32>
      %c0_14 = arith.constant 0 : index
      %c0_15 = arith.constant 0 : index
      %c0_16 = arith.constant 0 : index
      %21 = vector.load %arg6[%c0_14, %c0_15, %c0_16] : memref<1x128x128xf32, #tpu.memory_space<vmem>>, vector<1x128x128xf32>
      %22 = vector.shape_cast %21 : vector<1x128x128xf32> to vector<128x128xf32>
      %23 = vector.shape_cast %20 : vector<128x128xf32> to vector<1x128x128xf32>
      tpu.vector_store %arg6[%c0_14, %c0_15, %c0_16], %23 {strides = array<i32>} : memref<1x128x128xf32, #tpu.memory_space<vmem>>, vector<1x128x128xf32>,
    } else {
    }
    %c256_i32 = arith.constant 256 : i32
    %3 = arith.muli %arg2, %c256_i32 : i32
    %4 = tpu.assume_multiple %3, 256 : i32
    %c0 = arith.constant 0 : index
    %5 = arith.index_cast %4 : i32 to index
    %c0_1 = arith.constant 0 : index
    %6 = vector.load %arg4[%c0, %5, %c0_1] : memref<1x256x128xbf16, #tpu.memory_space<vmem>>, vector<1x256x128xbf16>
    %7 = vector.shape_cast %6 : vector<1x256x128xbf16> to vector<256x128xbf16>
    %c0_2 = arith.constant 0 : index
    %c0_3 = arith.constant 0 : index
    %c0_4 = arith.constant 0 : index
    %8 = vector.load %arg6[%c0_2, %c0_3, %c0_4] : memref<1x128x128xf32, #tpu.memory_space<vmem>>, vector<1x128x128xf32>
    %9 = vector.shape_cast %8 : vector<1x128x128xf32> to vector<128x128xf32>
    %c0_5 = arith.constant 0 : index
    %c0_6 = arith.constant 0 : index
    %c0_7 = arith.constant 0 : index
    %10 = vector.load %arg3[%c0_5, %c0_6, %c0_7] : memref<1x128x256xbf16, #tpu.memory_space<vmem>>, vector<1x128x256xbf16>
    %11 = vector.shape_cast %10 : vector<1x128x256xbf16> to vector<128x256xbf16>
    %cst = arith.constant dense<0.000000e+00> : vector<128x128xf32>
    %12 = tpu.matmul %11, %7, %cst {dimension_numbers = #tpu.dot_dimension_numbers<[1], [0], [0], [1], [0, 0, 1, 1], [], []>} : vector<128x256xbf16>, vector<256x128xbf16>, vector<128x128xf32> -> vector<128x128xf32>
    %13 = arith.addf %9, %12 : vector<128x128xf32>
    %c0_8 = arith.constant 0 : index
    %c0_9 = arith.constant 0 : index
    %c0_10 = arith.constant 0 : index
    %14 = vector.load %arg6[%c0_8, %c0_9, %c0_10] : memref<1x128x128xf32, #tpu.memory_space<vmem>>, vector<1x128x128xf32>
    %15 = vector.shape_cast %14 : vector<1x128x128xf32> to vector<128x128xf32>
    %16 = vector.shape_cast %13 : vector<128x128xf32> to vector<1x128x128xf32>
    tpu.vector_store %arg6[%c0_8, %c0_9, %c0_10], %16 {strides = array<i32>} : memref<1x128x128xf32, #tpu.memory_space<vmem>>, vector<1x128x128xf32>,
    %c0_i32_11 = arith.constant 0 : i32
    %17 = arith.cmpi eq, %arg2, %c0_i32_11 : i32
    %18 = arith.extui %17 : i1 to i32
    %c0_i32_12 = arith.constant 0 : i32
    %19 = arith.cmpi ne, %18, %c0_i32_12 : i32
    scf.if %19 {
      %c0_13 = arith.constant 0 : index
      %c0_14 = arith.constant 0 : index
      %c0_15 = arith.constant 0 : index
      %20 = vector.load %arg6[%c0_13, %c0_14, %c0_15] : memref<1x128x128xf32, #tpu.memory_space<vmem>>, vector<1x128x128xf32>
      %21 = vector.shape_cast %20 : vector<1x128x128xf32> to vector<128x128xf32>
      %c0_16 = arith.constant 0 : index
      %c0_17 = arith.constant 0 : index
      %22 = vector.load %arg5[%c0_16, %c0_17] : memref<1x128xf32, #tpu.memory_space<vmem>>, vector<1x128xf32>
      %23 = vector.broadcast %22 : vector<1x128xf32> to vector<128x128xf32>
      %24 = arith.addf %21, %23 : vector<128x128xf32>
      %cst_18 = arith.constant 0.000000e+00 : f32
      %25 = vector.broadcast %cst_18 : f32 to vector<128x128xf32>
      %26 = arith.maximumf %24, %25 : vector<128x128xf32>
      %c0_19 = arith.constant 0 : index
      %c0_20 = arith.constant 0 : index
      %c0_21 = arith.constant 0 : index
      %27 = vector.load %arg6[%c0_19, %c0_20, %c0_21] : memref<1x128x128xf32, #tpu.memory_space<vmem>>, vector<1x128x128xf32>
      %28 = vector.shape_cast %27 : vector<1x128x128xf32> to vector<128x128xf32>
      %29 = vector.shape_cast %26 : vector<128x128xf32> to vector<1x128x128xf32>
      tpu.vector_store %arg6[%c0_19, %c0_20, %c0_21], %29 {strides = array<i32>} : memref<1x128x128xf32, #tpu.memory_space<vmem>>, vector<1x128x128xf32>,
    } else {
    }
    return
  }
  func.func @transform_0(%arg0: i32, %arg1: i32, %arg2: i32) -> (i32, i32, i32) {
    %c0_i32 = arith.constant 0 : i32
    return %arg0, %arg1, %arg2 : i32, i32, i32
  }
  func.func @transform_1(%arg0: i32, %arg1: i32, %arg2: i32) -> (i32, i32, i32) {
    %c0_i32 = arith.constant 0 : i32
    %c0_i32_0 = arith.constant 0 : i32
    %c0_i32_1 = arith.constant 0 : i32
    return %arg0, %c0_i32, %c0_i32_0 : i32, i32, i32
  }
  func.func @transform_2(%arg0: i32, %arg1: i32, %arg2: i32) -> (i32, i32) {
    %c0_i32 = arith.constant 0 : i32
    %c0_i32_0 = arith.constant 0 : i32
    %c0_i32_1 = arith.constant 0 : i32
    return %c0_i32, %c0_i32_0 : i32, i32
  }
  func.func @transform_3(%arg0: i32, %arg1: i32, %arg2: i32) -> (i32, i32, i32) {
    %c0_i32 = arith.constant 0 : i32
    %c0_i32_0 = arith.constant 0 : i32
    return %arg0, %arg1, %c0_i32 : i32, i32, i32
  }
}

module attributes {stable_mosaic.version = 11 : i64} {
  func.func @_agg_kernel(%arg0: i32, %arg1: i32, %arg2: i32, %arg3: memref<1x128x256xbf16, #tpu.memory_space<vmem>>, %arg4: memref<1x256x128xbf16, #tpu.memory_space<vmem>>, %arg5: memref<1x128xf32, #tpu.memory_space<vmem>>, %arg6: memref<1x128x128xbf16, #tpu.memory_space<vmem>>, %arg7: memref<128x128xf32, #tpu.memory_space<vmem>>) attributes {dimension_semantics = [#tpu.dimension_semantics<parallel>, #tpu.dimension_semantics<parallel>, #tpu.dimension_semantics<arbitrary>], iteration_bounds = array<i64: 3, 2, 1>, scalar_prefetch = 0 : i64, scratch_operands = 1 : i64, tpu.core_type = #tpu.core_type<tc>, window_params = [{transform_indices = @transform_0, window_bounds = array<i64: 1, 128, 256>}, {transform_indices = @transform_1, window_bounds = array<i64: 1, 256, 128>}, {pipeline_mode = #tpu.pipeline_mode<synchronous>, transform_indices = @transform_2, window_bounds = array<i64: 1, 128>}, {transform_indices = @transform_3, window_bounds = array<i64: 1, 128, 128>}]} {
    %c0_i32 = arith.constant 0 : i32
    %0 = arith.cmpi eq, %arg2, %c0_i32 : i32
    %1 = arith.extui %0 : i1 to i32
    %c0_i32_0 = arith.constant 0 : i32
    %2 = arith.cmpi ne, %1, %c0_i32_0 : i32
    scf.if %2 {
      %cst_11 = arith.constant 0.000000e+00 : f32
      %17 = vector.broadcast %cst_11 : f32 to vector<128x128xf32>
      %c0_12 = arith.constant 0 : index
      %c0_13 = arith.constant 0 : index
      %18 = vector.load %arg7[%c0_12, %c0_13] : memref<128x128xf32, #tpu.memory_space<vmem>>, vector<128x128xf32>
      tpu.vector_store %arg7[%c0_12, %c0_13], %17 {strides = array<i32>} : memref<128x128xf32, #tpu.memory_space<vmem>>, vector<128x128xf32>,
    } else {
    }
    %c256_i32 = arith.constant 256 : i32
    %3 = arith.muli %arg2, %c256_i32 : i32
    %4 = tpu.assume_multiple %3, 256 : i32
    %c0 = arith.constant 0 : index
    %5 = arith.index_cast %4 : i32 to index
    %c0_1 = arith.constant 0 : index
    %6 = vector.load %arg4[%c0, %5, %c0_1] : memref<1x256x128xbf16, #tpu.memory_space<vmem>>, vector<1x256x128xbf16>
    %7 = vector.shape_cast %6 : vector<1x256x128xbf16> to vector<256x128xbf16>
    %c0_2 = arith.constant 0 : index
    %c0_3 = arith.constant 0 : index
    %8 = vector.load %arg7[%c0_2, %c0_3] : memref<128x128xf32, #tpu.memory_space<vmem>>, vector<128x128xf32>
    %c0_4 = arith.constant 0 : index
    %c0_5 = arith.constant 0 : index
    %c0_6 = arith.constant 0 : index
    %9 = vector.load %arg3[%c0_4, %c0_5, %c0_6] : memref<1x128x256xbf16, #tpu.memory_space<vmem>>, vector<1x128x256xbf16>
    %10 = vector.shape_cast %9 : vector<1x128x256xbf16> to vector<128x256xbf16>
    %cst = arith.constant dense<0.000000e+00> : vector<128x128xf32>
    %11 = tpu.matmul %10, %7, %cst {dimension_numbers = #tpu.dot_dimension_numbers<[1], [0], [0], [1], [0, 0, 1, 1], [], []>} : vector<128x256xbf16>, vector<256x128xbf16>, vector<128x128xf32> -> vector<128x128xf32>
    %12 = arith.addf %8, %11 : vector<128x128xf32>
    %c0_7 = arith.constant 0 : index
    %c0_8 = arith.constant 0 : index
    %13 = vector.load %arg7[%c0_7, %c0_8] : memref<128x128xf32, #tpu.memory_space<vmem>>, vector<128x128xf32>
    tpu.vector_store %arg7[%c0_7, %c0_8], %12 {strides = array<i32>} : memref<128x128xf32, #tpu.memory_space<vmem>>, vector<128x128xf32>,
    %c0_i32_9 = arith.constant 0 : i32
    %14 = arith.cmpi eq, %arg2, %c0_i32_9 : i32
    %15 = arith.extui %14 : i1 to i32
    %c0_i32_10 = arith.constant 0 : i32
    %16 = arith.cmpi ne, %15, %c0_i32_10 : i32
    scf.if %16 {
      %c0_11 = arith.constant 0 : index
      %c0_12 = arith.constant 0 : index
      %17 = vector.load %arg7[%c0_11, %c0_12] : memref<128x128xf32, #tpu.memory_space<vmem>>, vector<128x128xf32>
      %c0_13 = arith.constant 0 : index
      %c0_14 = arith.constant 0 : index
      %18 = vector.load %arg5[%c0_13, %c0_14] : memref<1x128xf32, #tpu.memory_space<vmem>>, vector<1x128xf32>
      %19 = vector.broadcast %18 : vector<1x128xf32> to vector<128x128xf32>
      %20 = arith.addf %17, %19 : vector<128x128xf32>
      %cst_15 = arith.constant 0.000000e+00 : f32
      %21 = vector.broadcast %cst_15 : f32 to vector<128x128xf32>
      %22 = arith.maximumf %20, %21 : vector<128x128xf32>
      %23 = arith.truncf %22 : vector<128x128xf32> to vector<128x128xbf16>
      %c0_16 = arith.constant 0 : index
      %c0_17 = arith.constant 0 : index
      %c0_18 = arith.constant 0 : index
      %24 = vector.load %arg6[%c0_16, %c0_17, %c0_18] : memref<1x128x128xbf16, #tpu.memory_space<vmem>>, vector<1x128x128xbf16>
      %25 = vector.shape_cast %24 : vector<1x128x128xbf16> to vector<128x128xbf16>
      %26 = vector.shape_cast %23 : vector<128x128xbf16> to vector<1x128x128xbf16>
      tpu.vector_store %arg6[%c0_16, %c0_17, %c0_18], %26 {strides = array<i32>} : memref<1x128x128xbf16, #tpu.memory_space<vmem>>, vector<1x128x128xbf16>,
    } else {
    }
    return
  }
  func.func @transform_0(%arg0: i32, %arg1: i32, %arg2: i32) -> (i32, i32, i32) {
    %c0_i32 = arith.constant 0 : i32
    return %arg0, %arg1, %arg2 : i32, i32, i32
  }
  func.func @transform_1(%arg0: i32, %arg1: i32, %arg2: i32) -> (i32, i32, i32) {
    %c0_i32 = arith.constant 0 : i32
    %c0_i32_0 = arith.constant 0 : i32
    %c0_i32_1 = arith.constant 0 : i32
    return %arg0, %c0_i32, %c0_i32_0 : i32, i32, i32
  }
  func.func @transform_2(%arg0: i32, %arg1: i32, %arg2: i32) -> (i32, i32) {
    %c0_i32 = arith.constant 0 : i32
    %c0_i32_0 = arith.constant 0 : i32
    %c0_i32_1 = arith.constant 0 : i32
    return %c0_i32, %c0_i32_0 : i32, i32
  }
  func.func @transform_3(%arg0: i32, %arg1: i32, %arg2: i32) -> (i32, i32, i32) {
    %c0_i32 = arith.constant 0 : i32
    %c0_i32_0 = arith.constant 0 : i32
    return %arg0, %arg1, %c0_i32 : i32, i32, i32
  }
}

</mosaic_0001>

<bundles_post_ra>
// kernel: contrast_reprsn_forward.4
= control target key start
LH: loop header
LB: loop body
LE: loop exit
PB: predicated region body
PF: predicated region fallthrough
CT: control target
= control target key end

     0   :  { %s862_s9 = smov 0   ;;  %s864_s10 = smov 0   ;;  %s957_s0 = inlined_call_operand.vmem [shape: bf16[3,256,128], index: 0, kind: input, shape index: {}]   ;;  %s958_s1 = inlined_call_operand.vmem [shape: bf16[128,128], index: 1, kind: input, shape index: {}]   ;;  %s959_s2 = inlined_call_operand.vmem [shape: bf16[3,256,128], index: 2, kind: output, shape index: {}]  }
   0x1   :  { %s866_s11 = smov 0   ;;  %s868_s12 = smov 0  }
   0x2   :  { %s870_s13 = smov 0  }
   0x3 LB: > { %s21_s14 = sadd.s32 1, %s837_s11  ;;  %s24_s15 = sadd.s32 1, %s841_s12  ;;  %s845_s13 = sphi %s870_s13, %s12_s13   ;;  %s841_s12 = sphi %s868_s12, %s963_s12   ;;  %s837_s11 = sphi %s866_s11, %s962_s11   ;;  %s833_s10 = sphi %s864_s10, %s961_s10   ;;  %s829_s9 = sphi %s862_s9, %s960_s9  }
   0x4   : > { %p22_p0 = scmp.ge.s32.totalorder %s21_s14, 2  ;;  %p583_p1 = scmp.ge.s32.totalorder %s845_s13, 1 }
   0x5   : > { %p133_p2 = scmp.lt.s32.totalorder %s845_s13, 7 }
   0x6   : > { %s965_s14 = smov (%p22_p0, %s21_s14), 0  ;;  %s967_s15 = smov (!%p22_p0, %s24_s15), %s841_s12 }
   0x7   : > { %p134_p3 = pnand %p583_p1, %p133_p2  ;;  %p26_p4 = scmp.ge.s32.totalorder %s967_s15, 3 }
   0x8   : > { %v791_v0 = vld [vmem:[%s958_s1] sm:$0xff] (!%p134_p3)   ;;  %s584_s18 = sshll.u32 (!%p134_p3), %s829_s9, 4  ;;  %v792_v1 = vld [vmem:[%s958_s1 + $0x8] sm:$0xff] (!%p134_p3)   ;;  %p164_p5 = scmp.lt.s32.totalorder (!%p134_p3), %s833_s10, 2  ;;  %v793_v2 = vld [vmem:[%s958_s1 + $0x10] sm:$0xff] (!%p134_p3)  }
   0x9   : > { %s969_s15 = smov (%p26_p4, %s967_s15), 0  ;;  %137 = sbr.rel (%p134_p3) target bundleno = 269 (0x10d), region = 28 }
   0xa   : > { %703 = vmatprep.subr.bf16.mxu0 (!%p134_p3), %v791_v0  ;;  %735 = vmatprep.subr.bf16.mxu1 (!%p134_p3), %v791_v0  ;;  %p166_p6 = scmp.lt.s32.totalorder (!%p134_p3), %s584_s18, 31  ;;  %v794_v3 = vld [vmem:[%s958_s1 + $0x18] sm:$0xff] (!%p134_p3)   ;;  %v795_v6 = vld [vmem:[%s958_s1 + $0x20] sm:$0xff] (!%p134_p3)   ;;  %v796_v7 = vld [vmem:[%s958_s1 + $0x28] sm:$0xff] (!%p134_p3)  }
   0xb   : > { %704 = vmatpush3.bf16.msra.mxu0 (!%p134_p3), %v791_v0  ;;  %743 = vmatpush3.bf16.msra.mxu1 (!%p134_p3), %v791_v0  ;;  %v797_v8 = vld [vmem:[%s958_s1 + $0x30] sm:$0xff] (!%p134_p3)   ;;  %v798_v9 = vld [vmem:[%s958_s1 + $0x38] sm:$0xff] (!%p134_p3)  }
   0xc   : > { %705 = vmatprep.subr.bf16.mxu0 (!%p134_p3), %v792_v1  ;;  %736 = vmatprep.subr.bf16.mxu1 (!%p134_p3), %v792_v1 }
   0xf   : > { %706 = vmatpush3.bf16.msra.mxu0 (!%p134_p3), %v792_v1  ;;  %744 = vmatpush3.bf16.msra.mxu1 (!%p134_p3), %v792_v1 }
  0x10   : > { %s971_s10 = smov (!%p164_p5, %s833_s10), 2  ;;  %s973_s18 = smov (!%p166_p6, %s584_s18), 31  ;;  %707 = vmatprep.subr.bf16.mxu0 %v793_v2  ;;  %737 = vmatprep.subr.bf16.mxu1 %v793_v2 }
  0x11   : > { %s585_s23 = sshll.u32 %s971_s10, 5 }
  0x12   : > { %s904_s24 = sadd.s32 %s585_s23, %s973_s18 }
  0x13   : > { %s586_s25 = sshll.u32 %s904_s24, 2  ;;  %708 = vmatpush3.bf16.msra.mxu0 %v793_v2  ;;  %745 = vmatpush3.bf16.msra.mxu1 %v793_v2 }
  0x14   : > { %s915_s30 = scalar_lea.vmem %s957_s0, %s586_s25  ;;  %709 = vmatprep.subr.bf16.mxu0 %v794_v3  ;;  %738 = vmatprep.subr.bf16.mxu1 %v794_v3  ;;  %s181_s18 = scalar_lea.vmem %s959_s2, %s586_s25 }
  0x15   : > { %v799_v4 = vld [vmem:[%s915_s30] sm:$0xff]   ;;  %v801_v10 = vld [vmem:[%s915_s30 + $0x8] sm:$0xff]   ;;  %v803_v12 = vld [vmem:[%s915_s30 + $0x10] sm:$0xff]  }
  0x16   : > { %v800_v5 = vld [vmem:[%s915_s30 + $0x20] sm:$0xff]   ;;  %719 = vmatprep.mubr.bf16.mxu0 %v799_v4  ;;  %v802_v11 = vld [vmem:[%s915_s30 + $0x28] sm:$0xff]   ;;  %v804_v13 = vld [vmem:[%s915_s30 + $0x30] sm:$0xff]  }
  0x17   : > { %727 = vmatprep.mubr.bf16.mxu1 %v800_v5  ;;  %710 = vmatpush3.bf16.msra.mxu0 %v794_v3  ;;  %v805_v14 = vld [vmem:[%s915_s30 + $0x18] sm:$0xff]  }
  0x18   : > { %746 = vmatpush3.bf16.msra.mxu1 %v794_v3  ;;  %711 = vmatprep.subr.bf16.mxu0 %v795_v6  ;;  %v806_v15 = vld [vmem:[%s915_s30 + $0x38] sm:$0xff]  }
  0x19   : > { %739 = vmatprep.subr.bf16.mxu1 %v795_v6 }
  0x1b   : > { %712 = vmatpush3.bf16.msra.mxu0 %v795_v6 }
  0x1c   : > { %747 = vmatpush3.bf16.msra.mxu1 %v795_v6  ;;  %713 = vmatprep.subr.bf16.mxu0 %v796_v7 }
  0x1d   : > { %740 = vmatprep.subr.bf16.mxu1 %v796_v7 }
  0x1f   : > { %714 = vmatpush3.bf16.msra.mxu0 %v796_v7 }
  0x20   : > { %748 = vmatpush3.bf16.msra.mxu1 %v796_v7  ;;  %715 = vmatprep.subr.bf16.mxu0 %v797_v8 }
  0x21   : > { %741 = vmatprep.subr.bf16.mxu1 %v797_v8 }
  0x23   : > { %716 = vmatpush3.bf16.msra.mxu0 %v797_v8 }
  0x24   : > { %749 = vmatpush3.bf16.msra.mxu1 %v797_v8  ;;  %717 = vmatprep.subr.bf16.mxu0 %v798_v9 }
  0x25   : > { %742 = vmatprep.subr.bf16.mxu1 %v798_v9 }
  0x27   : > { %718 = vmatpush3.bf16.msra.mxu0 %v798_v9 }
  0x28   : > { %750 = vmatpush3.bf16.msra.mxu1 %v798_v9 }
  0x2a   : > { %720 = vmatmul.mubr.bf16.vlgmr.msra.gmra.mrb[0].mxu0 %v801_v10 }
  0x2b   : > { %728 = vmatmul.mubr.bf16.vlgmr.msra.gmra.mrb[0].mxu1 %v802_v11  ;;  %723 = vmatprep.mubr.bf16.mxu0 %v803_v12 }
  0x2c   : > { %731 = vmatprep.mubr.bf16.mxu1 %v804_v13 }
  0x32   : > { %724 = vmatmul.mubr.bf16.gmra.mrb[4].mxu0 %v805_v14 }
  0x33   : > { %732 = vmatmul.mubr.bf16.gmra.mrb[4].mxu1 %v806_v15 }
  0xfd   : > { %v721_v16 = vpop.f32.mrb[0].mxu0 }
  0xfe   : > { %v729_v17 = vpop.f32.mrb[0].mxu1  ;;  %v346_v18 = vpop.f32.mrb[1].mxu0 }
  0xff   : > { %v378_v19 = vpop.f32.mrb[1].mxu1  ;;  %v722_v20 = vpop.f32.mrb[2].mxu0 }
 0x100   : > { %v730_v21 = vpop.f32.mrb[2].mxu1  ;;  %v648_v22 = vpack.c.bf16 %v722_v20, %v721_v16  ;;  %v349_v24 = vpop.f32.mrb[3].mxu0 }
 0x101   : > { %v668_v23 = vpack.c.bf16 %v730_v21, %v729_v17  ;;  %v381_v25 = vpop.f32.mrb[3].mxu1  ;;  %v643_v26 = vpack.c.bf16 %v349_v24, %v346_v18 }
 0x102   : > { %v663_v27 = vpack.c.bf16 %v381_v25, %v378_v19  ;;  %680 = vst [vmem:[%s181_s18 + $0x8] sm:$0xff] %v648_v22  }
 0x103   : > { %684 = vst [vmem:[%s181_s18 + $0x28] sm:$0xff] %v668_v23   ;;  %644 = vst [vmem:[%s181_s18] sm:$0xff] %v643_v26  }
 0x104   : > { %683 = vst [vmem:[%s181_s18 + $0x20] sm:$0xff] %v663_v27  }
 0x105   : > { %v725_v28 = vpop.f32.mrb[4].mxu0 }
 0x106   : > { %v733_v29 = vpop.f32.mrb[4].mxu1  ;;  %v362_v30 = vpop.f32.mrb[5].mxu0 }
 0x107   : > { %v394_v31 = vpop.f32.mrb[5].mxu1  ;;  %v726_v32 = vpop.f32.mrb[6].mxu0 }
 0x108   : > { %v734_v33 = vpop.f32.mrb[6].mxu1  ;;  %v658_v34 = vpack.c.bf16 %v726_v32, %v725_v28  ;;  %v365_v36 = vpop.f32.mrb[7].mxu0 }
 0x109   : > { %v678_v35 = vpack.c.bf16 %v734_v33, %v733_v29  ;;  %v397_v37 = vpop.f32.mrb[7].mxu1  ;;  %v653_v38 = vpack.c.bf16 %v365_v36, %v362_v30 }
 0x10a   : > { %v673_v39 = vpack.c.bf16 %v397_v37, %v394_v31  ;;  %682 = vst [vmem:[%s181_s18 + $0x18] sm:$0xff] %v658_v34  }
 0x10b   : > { %686 = vst [vmem:[%s181_s18 + $0x38] sm:$0xff] %v678_v35   ;;  %681 = vst [vmem:[%s181_s18 + $0x10] sm:$0xff] %v653_v38  }
 0x10c   : > { %685 = vst [vmem:[%s181_s18 + $0x30] sm:$0xff] %v673_v39  }
 0x10d PF: > { %s12_s13 = sadd.s32 1, %s845_s13   ;;  %s960_s9 = smov %s837_s11 }
 0x10e   : > { %p9_p7 = scmp.ge.s32.totalorder %s12_s13, 8   ;;  %s961_s10 = smov %s841_s12 }
 0x10f   : > { %s962_s11 = smov %s965_s14  ;;  %s963_s12 = smov %s969_s15 }
 0x110   :  { %11 = sbr.rel (!%p9_p7) target bundleno = 3 (0x3), region = 58 }

// kernel: contrast_reprsn_forward.7
= control target key start
LH: loop header
LB: loop body
LE: loop exit
PB: predicated region body
PF: predicated region fallthrough
CT: control target
= control target key end

     0   :  { %8 = vsyncpa [#allocation3], 0  ;;  %s1180_s12 = smov 0   ;;  %s1182_s13 = smov 0   ;;  %s1355_s0 = inlined_call_operand.vmem [shape: bf16[3,256,256], index: 0, kind: input, shape index: {}]   ;;  %s1356_s1 = inlined_call_operand.vmem [shape: bf16[3,256,128], index: 1, kind: input, shape index: {}]   ;;  %s1357_s2 = inlined_call_operand.hbm [shape: f32[1,128], index: 2, kind: input, shape index: {}]   ;;  %s1358_s3 = inlined_call_operand.vmem [shape: f32[3,256,128], index: 3, kind: output, shape index: {}]  }
   0x1   :  { %s1184_s14 = smov 0   ;;  %s1186_s15 = smov 0  }
   0x2   :  { %s1188_s16 = smov 0  }
   0x3 LB: > { %s863_s17 = sadd.s32 4294967295, %s1157_s16   ;;  %s29_s18 = sadd.s32 1, %s1149_s14  ;;  %s1157_s16 = sphi %s1188_s16, %s14_s16   ;;  %s1153_s15 = sphi %s1186_s15, %s1370_s15   ;;  %s1149_s14 = sphi %s1184_s14, %s1369_s14   ;;  %s1145_s13 = sphi %s1182_s13, %s1368_s13   ;;  %s1141_s12 = sphi %s1180_s12, %s1367_s12  }
   0x4   : > { %p31_p0 = scmp.ge.s32.totalorder %s29_s18, 2  ;;  %s33_s19 = sadd.s32 1, %s1153_s15 }
   0x5   : > { %p865_p1 = scmp.ge.s32.totalorder %s1157_s16, 1  ;;  %p143_p2 = scmp.lt.s32.totalorder %s1157_s16, 7 }
   0x6   : > { %s1372_s18 = smov (%p31_p0, %s29_s18), 0  ;;  %s1374_s19 = smov (!%p31_p0, %s33_s19), %s1153_s15 }
   0x7   : > { %p1213_p3 = pnand %p865_p1, %p143_p2  ;;  %p35_p4 = scmp.ge.s32.totalorder %s1374_s19, 3 }
   0x8   : > { %p1217_p5 = scmp.eq.s32.totalorder %s863_s17, 0  ;;  %s1159_s22 = smov [#allocation2]  }
   0x9   : > { %s1362_s20 = scalar_select %p1213_p3, 1, 0 }
   0xa   : > { %s1363_s21 = scalar_select %p1217_p5, 1, 0 }
   0xb   : > { %p999_p6 = pneg %p1213_p3  ;;  %s1376_s19 = smov (%p35_p4, %s1374_s19), 0 }
   0xc   : > { %s156_s23 = sshll.u32 %s1159_s22, 4  ;;  %s1087_s27 = scalar_lea.hbm %s1357_s2, 16  ;;  %s157_s23 = int_to_ptr.vmem [resolvable:$true] %s156_s23 }
   0xd   : > { %p1227_p7 = pnand %p1217_p5, %p999_p6  ;;  %p1088_p8 = scmp.ne.s32.totalorder %s1357_s2, %s1087_s27 }
   0xe   : > { %p1094_p12 = scmp.lt.u32.totalorder %s1087_s27, %s1357_s2 }
   0xf   : > { %p1089_p9 = pneg %p1227_p7 }
  0x11   : > { %p1090_p10 = pnand %p1089_p9, %p1088_p8 }
  0x13   : > { %p1091_p11 = pneg %p1090_p10 }
  0x15   : > { %p1096_p13 = pnand %p1094_p12, %p1091_p11 }
  0x17   : > { %1099 = shalt.err (!%p1096_p13)
}
  0x18   : > { %s1100_s5 = scalar_lea.vmem %s157_s23, 16  ;;  %s1107_s6 = scalar_lea.vmem %s157_s23, 32 }
  0x19   : > { %p1101_p0 = scmp.ne.s32.totalorder %s157_s23, %s1100_s5  ;;  %p1108_p4 = scmp.lt.s32.totalorder %s157_s23, %s157_s23 }
  0x1a   : > { %p1109_p6 = scmp.lt.s32.totalorder %s1107_s6, %s1100_s5 }
  0x1b   : > { %p1103_p1 = pnand %p1101_p0, %p1089_p9 }
  0x1c   : > { %p1110_p5 = por %p1109_p6, %p1108_p4 }
  0x1d   : > { %p1104_p2 = pneg %p1103_p1 }
  0x1f   : > { %p1111_p3 = pnand %p1110_p5, %p1104_p2 }
  0x21   : > { %1114 = shalt.err (!%p1111_p3)
}
  0x22   : > { %1002 = dma.hbm_to_vmem [thread:$0]  (!%p1227_p7), %s1357_s2, 16, %s157_s23, [#allocation3]  }
  0x23   : > { %p1365_p8 = scmp.ne.s32.totalorder %s1362_s20, 0 }
  0x24   : > { %p1366_p10 = scmp.ne.s32.totalorder (!%p1365_p8), %s1363_s21, 0 }
  0x25   : > { %196 = sbr.rel (%p1365_p8) target bundleno = 329 (0x149), region = 32 }
  0x2c   : > { %1136 = dma.done.wait (%p1366_p10), [#allocation3], 16  }
  0x2d   : > { %1138 = vsyncadd (%p1366_p10), [#allocation3], 4294967280  ;;  %p240_p5 = scmp.lt.s32.totalorder %s1145_s13, 2  ;;  %s870_s9 = sshll.u32 %s1141_s12, 4  ;;  %v1300_v40 = vld [vmem:[#allocation2] ss:$0 sm:$0xff] }
  0x2e   : > { %p242_p3 = scmp.lt.s32.totalorder %s870_s9, 31 }
  0x2f   : > { %s1378_s13 = smov (!%p240_p5, %s1145_s13), 2 }
  0x30   : > { %s1380_s9 = smov (!%p242_p3, %s870_s9), 31  ;;  %s914_s10 = sshll.u32 %s1378_s13, 7 }
  0x31   : > { %s1259_s20 = scalar_lea.vmem %s1356_s1, %s914_s10  ;;  %s877_s21 = sshll.u32 %s1378_s13, 5 }
  0x32   : > { %v1047_v0 = vld [vmem:[%s1259_s20 + $0x40] sm:$0xff]   ;;  %s1262_s22 = sadd.s32 %s877_s21, %s1380_s9  ;;  %v1049_v2 = vld [vmem:[%s1259_s20 + $0x48] sm:$0xff]   ;;  %v1051_v4 = vld [vmem:[%s1259_s20 + $0x50] sm:$0xff]   ;;  %s871_s12 = sshll.u32 %s1380_s9, 1 }
  0x33   : > { %v1048_v1 = vld [vmem:[%s1259_s20] sm:$0xff]   ;;  %915 = vmatprep.subr.bf16.mxu0 %v1047_v0  ;;  %979 = vmatprep.subr.bf16.mxu1 %v1047_v0  ;;  %v1050_v3 = vld [vmem:[%s1259_s20 + $0x8] sm:$0xff]   ;;  %s872_s23 = sshll.u32 %s1378_s13, 6  ;;  %v1052_v5 = vld [vmem:[%s1259_s20 + $0x10] sm:$0xff]   ;;  %s878_s28 = sshll.u32 %s1262_s22, 3 }
  0x34   : > { %916 = vmatpush3.bf16.msra.mxu0 %v1048_v1  ;;  %987 = vmatpush3.bf16.msra.mxu1 %v1048_v1  ;;  %v1053_v6 = vld [vmem:[%s1259_s20 + $0x58] sm:$0xff]   ;;  %s249_s24 = sadd.s32 %s872_s23, %s871_s12  ;;  %v1055_v8 = vld [vmem:[%s1259_s20 + $0x60] sm:$0xff]   ;;  %v1057_v10 = vld [vmem:[%s1259_s20 + $0x68] sm:$0xff]   ;;  %s1308_s4 = scalar_lea.vmem %s1358_s3, %s878_s28 }
  0x35   : > { %917 = vmatprep.subr.bf16.mxu0 %v1049_v2  ;;  %980 = vmatprep.subr.bf16.mxu1 %v1049_v2  ;;  %v1054_v7 = vld [vmem:[%s1259_s20 + $0x18] sm:$0xff]   ;;  %s873_s25 = sshll.u32 %s249_s24, 2  ;;  %v1056_v9 = vld [vmem:[%s1259_s20 + $0x20] sm:$0xff]   ;;  %v1058_v13 = vld [vmem:[%s1259_s20 + $0x28] sm:$0xff]  }
  0x36   : > { %s1275_s27 = scalar_lea.vmem %s1355_s0, %s873_s25  ;;  %v1059_v14 = vld [vmem:[%s1259_s20 + $0x70] sm:$0xff]   ;;  %v1061_v16 = vld [vmem:[%s1259_s20 + $0x78] sm:$0xff]  }
  0x37   : > { %v1065_v11 = vld [vmem:[%s1275_s27 + $0x4] ss:$8 sps:$4 sm:$0xff]   ;;  %v1060_v15 = vld [vmem:[%s1259_s20 + $0x30] sm:$0xff]   ;;  %v1062_v17 = vld [vmem:[%s1259_s20 + $0x38] sm:$0xff]  }
  0x38   : > { %918 = vmatpush3.bf16.msra.mxu0 %v1050_v3  ;;  %988 = vmatpush3.bf16.msra.mxu1 %v1050_v3  ;;  %v1068_v12 = vld [vmem:[%s1275_s27 + $0x44] ss:$8 sps:$4 sm:$0xff]   ;;  %v1063_v18 = vld [vmem:[%s1275_s27] ss:$8 sps:$4 sm:$0xff]   ;;  %v1069_v20 = vld [vmem:[%s1275_s27 + $0x14] ss:$8 sps:$4 sm:$0xff]  }
  0x39   : > { %919 = vmatprep.subr.bf16.mxu0 %v1051_v4  ;;  %981 = vmatprep.subr.bf16.mxu1 %v1051_v4  ;;  %v1066_v19 = vld [vmem:[%s1275_s27 + $0x40] ss:$8 sps:$4 sm:$0xff]   ;;  %v1071_v21 = vld [vmem:[%s1275_s27 + $0x54] ss:$8 sps:$4 sm:$0xff]   ;;  %v1073_v22 = vld [vmem:[%s1275_s27 + $0x10] ss:$8 sps:$4 sm:$0xff]  }
  0x3a   : > { %567 = vmatprep.mubr.bf16.mxu0 %v1065_v11  ;;  %599 = vmatprep.mubr.bf16.mxu1 %v1068_v12  ;;  %v1074_v23 = vld [vmem:[%s1275_s27 + $0x50] ss:$8 sps:$4 sm:$0xff]   ;;  %v1075_v24 = vld [vmem:[%s1275_s27 + $0x24] ss:$8 sps:$4 sm:$0xff]   ;;  %v1079_v26 = vld [vmem:[%s1275_s27 + $0x20] ss:$8 sps:$4 sm:$0xff]  }
  0x3b   : > { %v1077_v25 = vld [vmem:[%s1275_s27 + $0x64] ss:$8 sps:$4 sm:$0xff]   ;;  %v1080_v27 = vld [vmem:[%s1275_s27 + $0x60] ss:$8 sps:$4 sm:$0xff]   ;;  %v1081_v28 = vld [vmem:[%s1275_s27 + $0x34] ss:$8 sps:$4 sm:$0xff]  }
  0x3c   : > { %920 = vmatpush3.bf16.msra.mxu0 %v1052_v5  ;;  %989 = vmatpush3.bf16.msra.mxu1 %v1052_v5  ;;  %v1083_v29 = vld [vmem:[%s1275_s27 + $0x74] ss:$8 sps:$4 sm:$0xff]   ;;  %v1085_v30 = vld [vmem:[%s1275_s27 + $0x30] ss:$8 sps:$4 sm:$0xff]  }
  0x3d   : > { %921 = vmatprep.subr.bf16.mxu0 %v1053_v6  ;;  %982 = vmatprep.subr.bf16.mxu1 %v1053_v6  ;;  %v1086_v31 = vld [vmem:[%s1275_s27 + $0x70] ss:$8 sps:$4 sm:$0xff]  }
  0x40   : > { %922 = vmatpush3.bf16.msra.mxu0 %v1054_v7  ;;  %990 = vmatpush3.bf16.msra.mxu1 %v1054_v7 }
  0x41   : > { %923 = vmatprep.subr.bf16.mxu0 %v1055_v8  ;;  %983 = vmatprep.subr.bf16.mxu1 %v1055_v8 }
  0x44   : > { %924 = vmatpush3.bf16.msra.mxu0 %v1056_v9  ;;  %991 = vmatpush3.bf16.msra.mxu1 %v1056_v9 }
  0x45   : > { %925 = vmatprep.subr.bf16.mxu0 %v1057_v10  ;;  %984 = vmatprep.subr.bf16.mxu1 %v1057_v10 }
  0x48   : > { %926 = vmatpush3.bf16.msra.mxu0 %v1058_v13  ;;  %992 = vmatpush3.bf16.msra.mxu1 %v1058_v13 }
  0x49   : > { %927 = vmatprep.subr.bf16.mxu0 %v1059_v14  ;;  %985 = vmatprep.subr.bf16.mxu1 %v1059_v14 }
  0x4c   : > { %928 = vmatpush3.bf16.msra.mxu0 %v1060_v15  ;;  %993 = vmatpush3.bf16.msra.mxu1 %v1060_v15 }
  0x4d   : > { %929 = vmatprep.subr.bf16.mxu0 %v1061_v16  ;;  %986 = vmatprep.subr.bf16.mxu1 %v1061_v16 }
  0x50   : > { %930 = vmatpush3.bf16.msra.mxu0 %v1062_v17  ;;  %994 = vmatpush3.bf16.msra.mxu1 %v1062_v17 }
  0x53   : > { %568 = vmatmul.mubr.bf16.vlgmr.msra.gmra.mrb[0].mxu0 %v1063_v18  ;;  %600 = vmatmul.mubr.bf16.vlgmr.msra.gmra.mrb[0].mxu1 %v1066_v19 }
  0x54   : > { %575 = vmatprep.mubr.bf16.mxu0 %v1069_v20  ;;  %607 = vmatprep.mubr.bf16.mxu1 %v1071_v21 }
  0x5b   : > { %576 = vmatmul.mubr.bf16.gmra.mrb[4].mxu0 %v1073_v22  ;;  %608 = vmatmul.mubr.bf16.gmra.mrb[4].mxu1 %v1074_v23 }
  0x5c   : > { %583 = vmatprep.mubr.bf16.mxu0 %v1075_v24  ;;  %615 = vmatprep.mubr.bf16.mxu1 %v1077_v25 }
  0x63   : > { %584 = vmatmul.mubr.bf16.gmra.mrb[8].mxu0 %v1079_v26  ;;  %616 = vmatmul.mubr.bf16.gmra.mrb[8].mxu1 %v1080_v27 }
  0x64   : > { %591 = vmatprep.mubr.bf16.mxu0 %v1081_v28  ;;  %623 = vmatprep.mubr.bf16.mxu1 %v1083_v29 }
  0x6b   : > { %592 = vmatmul.mubr.bf16.gmra.mrb[12].mxu0 %v1085_v30  ;;  %624 = vmatmul.mubr.bf16.gmra.mrb[12].mxu1 %v1086_v31 }
 0x126   : > { %v931_v32 = vpop.f32.mrb[0].mxu0  ;;  %v955_v33 = vpop.f32.mrb[0].mxu1 }
 0x127   : > { %v932_v34 = vpop.f32.mrb[1].mxu0  ;;  %v956_v35 = vpop.f32.mrb[1].mxu1 }
 0x128   : > { %v933_v36 = vadd.f32 %v932_v34, %v931_v32  ;;  %v957_v37 = vadd.f32 %v956_v35, %v955_v33  ;;  %v934_v38 = vpop.f32.mrb[2].mxu0  ;;  %v958_v39 = vpop.f32.mrb[2].mxu1 }
 0x129   : > { %v935_v41 = vpop.f32.mrb[3].mxu0  ;;  %v959_v42 = vpop.f32.mrb[3].mxu1 }
 0x12a   : > { %v936_v43 = vadd.f32 %v935_v41, %v934_v38  ;;  %v960_v44 = vadd.f32 %v959_v42, %v958_v39  ;;  %v690_v45 = vadd.f32 %v933_v36, %v1300_v40  ;;  %v698_v46 = vadd.f32 %v957_v37, %v1300_v40 }
 0x12c   : > { %v706_v47 = vmax.f32 %v690_v45, 0.0  ;;  %v714_v48 = vmax.f32 %v698_v46, 0.0  ;;  %v691_v49 = vadd.f32 %v936_v43, %v1300_v40  ;;  %v699_v50 = vadd.f32 %v960_v44, %v1300_v40 }
 0x12e   : > { %v937_v51 = vpop.f32.mrb[4].mxu0  ;;  %v961_v52 = vpop.f32.mrb[4].mxu1  ;;  %722 = vst [vmem:[%s1308_s4] sm:$0xff] %v706_v47  ;;  %730 = vst [vmem:[%s1308_s4 + $0x40] sm:$0xff] %v714_v48  ;;  %v707_v55 = vmax.f32 %v691_v49, 0.0  ;;  %v715_v56 = vmax.f32 %v699_v50, 0.0 }
 0x12f   : > { %v938_v53 = vpop.f32.mrb[5].mxu0  ;;  %v962_v54 = vpop.f32.mrb[5].mxu1 }
 0x130   : > { %v939_v57 = vadd.f32 %v938_v53, %v937_v51  ;;  %v963_v58 = vadd.f32 %v962_v54, %v961_v52  ;;  %v940_v59 = vpop.f32.mrb[6].mxu0  ;;  %v964_v60 = vpop.f32.mrb[6].mxu1  ;;  %723 = vst [vmem:[%s1308_s4 + $0x8] sm:$0xff] %v707_v55  ;;  %731 = vst [vmem:[%s1308_s4 + $0x48] sm:$0xff] %v715_v56 }
 0x131   : > { %v941_v61 = vpop.f32.mrb[7].mxu0  ;;  %v965_v62 = vpop.f32.mrb[7].mxu1 }
 0x132   : > { %v942_v63 = vadd.f32 %v941_v61, %v940_v59  ;;  %v966_v0 = vadd.f32 %v965_v62, %v964_v60  ;;  %v692_v1 = vadd.f32 %v939_v57, %v1300_v40  ;;  %v700_v2 = vadd.f32 %v963_v58, %v1300_v40 }
 0x134   : > { %v708_v3 = vmax.f32 %v692_v1, 0.0  ;;  %v716_v4 = vmax.f32 %v700_v2, 0.0  ;;  %v693_v5 = vadd.f32 %v942_v63, %v1300_v40  ;;  %v701_v6 = vadd.f32 %v966_v0, %v1300_v40 }
 0x136   : > { %v943_v7 = vpop.f32.mrb[8].mxu0  ;;  %v967_v8 = vpop.f32.mrb[8].mxu1  ;;  %724 = vst [vmem:[%s1308_s4 + $0x10] sm:$0xff] %v708_v3  ;;  %732 = vst [vmem:[%s1308_s4 + $0x50] sm:$0xff] %v716_v4  ;;  %v709_v11 = vmax.f32 %v693_v5, 0.0  ;;  %v717_v12 = vmax.f32 %v701_v6, 0.0 }
 0x137   : > { %v944_v9 = vpop.f32.mrb[9].mxu0  ;;  %v968_v10 = vpop.f32.mrb[9].mxu1 }
 0x138   : > { %v945_v13 = vadd.f32 %v944_v9, %v943_v7  ;;  %v969_v14 = vadd.f32 %v968_v10, %v967_v8  ;;  %v946_v15 = vpop.f32.mrb[10].mxu0  ;;  %v970_v16 = vpop.f32.mrb[10].mxu1  ;;  %725 = vst [vmem:[%s1308_s4 + $0x18] sm:$0xff] %v709_v11  ;;  %733 = vst [vmem:[%s1308_s4 + $0x58] sm:$0xff] %v717_v12 }
 0x139   : > { %v947_v17 = vpop.f32.mrb[11].mxu0  ;;  %v971_v18 = vpop.f32.mrb[11].mxu1 }
 0x13a   : > { %v948_v19 = vadd.f32 %v947_v17, %v946_v15  ;;  %v972_v20 = vadd.f32 %v971_v18, %v970_v16  ;;  %v694_v21 = vadd.f32 %v945_v13, %v1300_v40  ;;  %v702_v22 = vadd.f32 %v969_v14, %v1300_v40 }
 0x13c   : > { %v710_v23 = vmax.f32 %v694_v21, 0.0  ;;  %v718_v24 = vmax.f32 %v702_v22, 0.0  ;;  %v695_v25 = vadd.f32 %v948_v19, %v1300_v40  ;;  %v703_v26 = vadd.f32 %v972_v20, %v1300_v40 }
 0x13e   : > { %v949_v27 = vpop.f32.mrb[12].mxu0  ;;  %v973_v28 = vpop.f32.mrb[12].mxu1  ;;  %726 = vst [vmem:[%s1308_s4 + $0x20] sm:$0xff] %v710_v23  ;;  %734 = vst [vmem:[%s1308_s4 + $0x60] sm:$0xff] %v718_v24  ;;  %v711_v31 = vmax.f32 %v695_v25, 0.0  ;;  %v719_v32 = vmax.f32 %v703_v26, 0.0 }
 0x13f   : > { %v950_v29 = vpop.f32.mrb[13].mxu0  ;;  %v974_v30 = vpop.f32.mrb[13].mxu1 }
 0x140   : > { %v951_v33 = vadd.f32 %v950_v29, %v949_v27  ;;  %v975_v34 = vadd.f32 %v974_v30, %v973_v28  ;;  %v952_v35 = vpop.f32.mrb[14].mxu0  ;;  %v976_v36 = vpop.f32.mrb[14].mxu1  ;;  %727 = vst [vmem:[%s1308_s4 + $0x28] sm:$0xff] %v711_v31  ;;  %735 = vst [vmem:[%s1308_s4 + $0x68] sm:$0xff] %v719_v32 }
 0x141   : > { %v953_v37 = vpop.f32.mrb[15].mxu0  ;;  %v977_v38 = vpop.f32.mrb[15].mxu1 }
 0x142   : > { %v954_v39 = vadd.f32 %v953_v37, %v952_v35  ;;  %v978_v41 = vadd.f32 %v977_v38, %v976_v36  ;;  %v696_v42 = vadd.f32 %v951_v33, %v1300_v40  ;;  %v704_v43 = vadd.f32 %v975_v34, %v1300_v40 }
 0x144   : > { %v712_v44 = vmax.f32 %v696_v42, 0.0  ;;  %v720_v45 = vmax.f32 %v704_v43, 0.0  ;;  %v697_v46 = vadd.f32 %v954_v39, %v1300_v40  ;;  %v705_v47 = vadd.f32 %v978_v41, %v1300_v40 }
 0x146   : > { %728 = vst [vmem:[%s1308_s4 + $0x30] sm:$0xff] %v712_v44  ;;  %736 = vst [vmem:[%s1308_s4 + $0x70] sm:$0xff] %v720_v45  ;;  %v713_v48 = vmax.f32 %v697_v46, 0.0  ;;  %v721_v49 = vmax.f32 %v705_v47, 0.0 }
 0x148   : > { %729 = vst [vmem:[%s1308_s4 + $0x38] sm:$0xff] %v713_v48  ;;  %737 = vst [vmem:[%s1308_s4 + $0x78] sm:$0xff] %v721_v49 }
 0x149 PF: > { %s14_s16 = sadd.s32 1, %s1157_s16   ;;  %s1367_s12 = smov %s1149_s14 }
 0x14a   : > { %p11_p7 = scmp.ge.s32.totalorder %s14_s16, 8   ;;  %s1368_s13 = smov %s1153_s15 }
 0x14b   : > { %s1369_s14 = smov %s1372_s18  ;;  %s1370_s15 = smov %s1376_s19 }
 0x14c   :  { %13 = sbr.rel (!%p11_p7) target bundleno = 3 (0x3), region = 79 }
 0x153   :  { %768 = vsyncpa [#allocation3], 1 }
 0x154   :  { %770 = vsyncpa [#allocation3 + $0x1], 1 }

// kernel: contrast_reprsn_forward.5
= control target key start
LH: loop header
LB: loop body
LE: loop exit
PB: predicated region body
PF: predicated region fallthrough
CT: control target
= control target key end

     0   :  { %8 = vsyncpa [#allocation4], 0  ;;  %s1322_s12 = smov 0   ;;  %s1324_s13 = smov 0   ;;  %s1495_s0 = inlined_call_operand.vmem [shape: bf16[3,256,256], index: 0, kind: input, shape index: {}]   ;;  %s1496_s1 = inlined_call_operand.vmem [shape: bf16[3,256,128], index: 1, kind: input, shape index: {}]   ;;  %s1497_s2 = inlined_call_operand.hbm [shape: f32[1,128], index: 2, kind: input, shape index: {}]   ;;  %s1498_s3 = inlined_call_operand.vmem [shape: bf16[3,256,128], index: 3, kind: output, shape index: {}]  }
   0x1   :  { %s1326_s14 = smov 0   ;;  %s1328_s15 = smov 0  }
   0x2   :  { %s1330_s16 = smov 0  }
   0x3 LB: > { %s927_s17 = sadd.s32 4294967295, %s1299_s16   ;;  %s29_s18 = sadd.s32 1, %s1291_s14  ;;  %s1299_s16 = sphi %s1330_s16, %s14_s16   ;;  %s1295_s15 = sphi %s1328_s15, %s1510_s15   ;;  %s1291_s14 = sphi %s1326_s14, %s1509_s14   ;;  %s1287_s13 = sphi %s1324_s13, %s1508_s13   ;;  %s1283_s12 = sphi %s1322_s12, %s1507_s12  }
   0x4   : > { %p31_p0 = scmp.ge.s32.totalorder %s29_s18, 2  ;;  %s33_s19 = sadd.s32 1, %s1295_s15 }
   0x5   : > { %p929_p1 = scmp.ge.s32.totalorder %s1299_s16, 1  ;;  %p143_p2 = scmp.lt.s32.totalorder %s1299_s16, 7 }
   0x6   : > { %s1512_s18 = smov (%p31_p0, %s29_s18), 0  ;;  %s1514_s19 = smov (!%p31_p0, %s33_s19), %s1295_s15 }
   0x7   : > { %p1355_p3 = pnand %p929_p1, %p143_p2  ;;  %p35_p4 = scmp.ge.s32.totalorder %s1514_s19, 3 }
   0x8   : > { %p1359_p5 = scmp.eq.s32.totalorder %s927_s17, 0  ;;  %s1301_s22 = smov [#allocation3]  }
   0x9   : > { %s1502_s20 = scalar_select %p1355_p3, 1, 0 }
   0xa   : > { %s1503_s21 = scalar_select %p1359_p5, 1, 0 }
   0xb   : > { %p1142_p6 = pneg %p1355_p3  ;;  %s1516_s19 = smov (%p35_p4, %s1514_s19), 0 }
   0xc   : > { %s156_s23 = sshll.u32 %s1301_s22, 4  ;;  %s1229_s27 = scalar_lea.hbm %s1497_s2, 16  ;;  %s157_s23 = int_to_ptr.vmem [resolvable:$true] %s156_s23 }
   0xd   : > { %p1369_p7 = pnand %p1359_p5, %p1142_p6  ;;  %p1230_p8 = scmp.ne.s32.totalorder %s1497_s2, %s1229_s27 }
   0xe   : > { %p1236_p12 = scmp.lt.u32.totalorder %s1229_s27, %s1497_s2 }
   0xf   : > { %p1231_p9 = pneg %p1369_p7 }
  0x11   : > { %p1232_p10 = pnand %p1231_p9, %p1230_p8 }
  0x13   : > { %p1233_p11 = pneg %p1232_p10 }
  0x15   : > { %p1238_p13 = pnand %p1236_p12, %p1233_p11 }
  0x17   : > { %1241 = shalt.err (!%p1238_p13)
}
  0x18   : > { %s1242_s5 = scalar_lea.vmem %s157_s23, 16  ;;  %s1249_s6 = scalar_lea.vmem %s157_s23, 32 }
  0x19   : > { %p1243_p0 = scmp.ne.s32.totalorder %s157_s23, %s1242_s5  ;;  %p1250_p4 = scmp.lt.s32.totalorder %s157_s23, %s157_s23 }
  0x1a   : > { %p1251_p6 = scmp.lt.s32.totalorder %s1249_s6, %s1242_s5 }
  0x1b   : > { %p1245_p1 = pnand %p1243_p0, %p1231_p9 }
  0x1c   : > { %p1252_p5 = por %p1251_p6, %p1250_p4 }
  0x1d   : > { %p1246_p2 = pneg %p1245_p1 }
  0x1f   : > { %p1253_p3 = pnand %p1252_p5, %p1246_p2 }
  0x21   : > { %1256 = shalt.err (!%p1253_p3)
}
  0x22   : > { %1145 = dma.hbm_to_vmem [thread:$0]  (!%p1369_p7), %s1497_s2, 16, %s157_s23, [#allocation4]  }
  0x23   : > { %p1505_p8 = scmp.ne.s32.totalorder %s1502_s20, 0 }
  0x24   : > { %p1506_p10 = scmp.ne.s32.totalorder (!%p1505_p8), %s1503_s21, 0 }
  0x25   : > { %196 = sbr.rel (%p1505_p8) target bundleno = 332 (0x14c), region = 32 }
  0x2c   : > { %1278 = dma.done.wait (%p1506_p10), [#allocation4], 16  }
  0x2d   : > { %1280 = vsyncadd (%p1506_p10), [#allocation4], 4294967280  ;;  %p240_p5 = scmp.lt.s32.totalorder %s1287_s13, 2  ;;  %s934_s9 = sshll.u32 %s1283_s12, 4  ;;  %v1448_v35 = vld [vmem:[#allocation3] ss:$0 sm:$0xff] }
  0x2e   : > { %p242_p3 = scmp.lt.s32.totalorder %s934_s9, 31 }
  0x2f   : > { %s1518_s13 = smov (!%p240_p5, %s1287_s13), 2 }
  0x30   : > { %s994_s10 = sshll.u32 %s1518_s13, 7  ;;  %s1520_s9 = smov (!%p242_p3, %s934_s9), 31 }
  0x31   : > { %s1404_s20 = scalar_lea.vmem %s1496_s1, %s994_s10  ;;  %s935_s12 = sshll.u32 %s1520_s9, 1 }
  0x32   : > { %v1189_v0 = vld [vmem:[%s1404_s20 + $0x40] sm:$0xff]   ;;  %v1191_v2 = vld [vmem:[%s1404_s20 + $0x48] sm:$0xff]   ;;  %v1193_v4 = vld [vmem:[%s1404_s20 + $0x50] sm:$0xff]   ;;  %s936_s21 = sshll.u32 %s1518_s13, 6  ;;  %s941_s27 = sshll.u32 %s1518_s13, 5 }
  0x33   : > { %v1190_v1 = vld [vmem:[%s1404_s20] sm:$0xff]   ;;  %1058 = vmatprep.subr.bf16.mxu0 %v1189_v0  ;;  %1122 = vmatprep.subr.bf16.mxu1 %v1189_v0  ;;  %v1192_v3 = vld [vmem:[%s1404_s20 + $0x8] sm:$0xff]   ;;  %v1194_v5 = vld [vmem:[%s1404_s20 + $0x10] sm:$0xff]   ;;  %s249_s22 = sadd.s32 %s936_s21, %s935_s12  ;;  %s265_s28 = sadd.s32 %s941_s27, %s1520_s9 }
  0x34   : > { %1059 = vmatpush3.bf16.msra.mxu0 %v1190_v1  ;;  %1130 = vmatpush3.bf16.msra.mxu1 %v1190_v1  ;;  %v1195_v6 = vld [vmem:[%s1404_s20 + $0x58] sm:$0xff]   ;;  %s937_s23 = sshll.u32 %s249_s22, 2  ;;  %v1197_v8 = vld [vmem:[%s1404_s20 + $0x60] sm:$0xff]   ;;  %v1199_v10 = vld [vmem:[%s1404_s20 + $0x68] sm:$0xff]   ;;  %s942_s29 = sshll.u32 %s265_s28, 2 }
  0x35   : > { %1060 = vmatprep.subr.bf16.mxu0 %v1191_v2  ;;  %1123 = vmatprep.subr.bf16.mxu1 %v1191_v2  ;;  %v1196_v7 = vld [vmem:[%s1404_s20 + $0x18] sm:$0xff]   ;;  %s1422_s26 = scalar_lea.vmem %s1495_s0, %s937_s23  ;;  %v1198_v9 = vld [vmem:[%s1404_s20 + $0x20] sm:$0xff]   ;;  %v1200_v13 = vld [vmem:[%s1404_s20 + $0x28] sm:$0xff]   ;;  %s1458_s4 = scalar_lea.vmem %s1498_s3, %s942_s29 }
  0x36   : > { %v1207_v11 = vld [vmem:[%s1422_s26 + $0x4] ss:$8 sps:$4 sm:$0xff]   ;;  %v1201_v14 = vld [vmem:[%s1404_s20 + $0x70] sm:$0xff]   ;;  %v1203_v16 = vld [vmem:[%s1404_s20 + $0x78] sm:$0xff]  }
  0x37   : > { %v1210_v12 = vld [vmem:[%s1422_s26 + $0x44] ss:$8 sps:$4 sm:$0xff]   ;;  %567 = vmatprep.mubr.bf16.mxu0 %v1207_v11  ;;  %v1202_v15 = vld [vmem:[%s1404_s20 + $0x30] sm:$0xff]   ;;  %v1204_v17 = vld [vmem:[%s1404_s20 + $0x38] sm:$0xff]  }
  0x38   : > { %1061 = vmatpush3.bf16.msra.mxu0 %v1192_v3  ;;  %1131 = vmatpush3.bf16.msra.mxu1 %v1192_v3  ;;  %v1205_v18 = vld [vmem:[%s1422_s26] ss:$8 sps:$4 sm:$0xff]   ;;  %v1211_v20 = vld [vmem:[%s1422_s26 + $0x14] ss:$8 sps:$4 sm:$0xff]   ;;  %v1215_v22 = vld [vmem:[%s1422_s26 + $0x10] ss:$8 sps:$4 sm:$0xff]  }
  0x39   : > { %1062 = vmatprep.subr.bf16.mxu0 %v1193_v4  ;;  %1124 = vmatprep.subr.bf16.mxu1 %v1193_v4  ;;  %v1208_v19 = vld [vmem:[%s1422_s26 + $0x40] ss:$8 sps:$4 sm:$0xff]   ;;  %v1213_v21 = vld [vmem:[%s1422_s26 + $0x54] ss:$8 sps:$4 sm:$0xff]   ;;  %v1216_v23 = vld [vmem:[%s1422_s26 + $0x50] ss:$8 sps:$4 sm:$0xff]  }
  0x3a   : > { %599 = vmatprep.mubr.bf16.mxu1 %v1210_v12  ;;  %v1217_v24 = vld [vmem:[%s1422_s26 + $0x24] ss:$8 sps:$4 sm:$0xff]   ;;  %v1221_v26 = vld [vmem:[%s1422_s26 + $0x20] ss:$8 sps:$4 sm:$0xff]   ;;  %v1223_v28 = vld [vmem:[%s1422_s26 + $0x34] ss:$8 sps:$4 sm:$0xff]  }
  0x3b   : > { %v1219_v25 = vld [vmem:[%s1422_s26 + $0x64] ss:$8 sps:$4 sm:$0xff]   ;;  %v1222_v27 = vld [vmem:[%s1422_s26 + $0x60] ss:$8 sps:$4 sm:$0xff]   ;;  %v1225_v29 = vld [vmem:[%s1422_s26 + $0x74] ss:$8 sps:$4 sm:$0xff]  }
  0x3c   : > { %1063 = vmatpush3.bf16.msra.mxu0 %v1194_v5  ;;  %1132 = vmatpush3.bf16.msra.mxu1 %v1194_v5  ;;  %v1227_v30 = vld [vmem:[%s1422_s26 + $0x30] ss:$8 sps:$4 sm:$0xff]  }
  0x3d   : > { %1064 = vmatprep.subr.bf16.mxu0 %v1195_v6  ;;  %1125 = vmatprep.subr.bf16.mxu1 %v1195_v6  ;;  %v1228_v31 = vld [vmem:[%s1422_s26 + $0x70] ss:$8 sps:$4 sm:$0xff]  }
  0x40   : > { %1065 = vmatpush3.bf16.msra.mxu0 %v1196_v7  ;;  %1133 = vmatpush3.bf16.msra.mxu1 %v1196_v7 }
  0x41   : > { %1066 = vmatprep.subr.bf16.mxu0 %v1197_v8  ;;  %1126 = vmatprep.subr.bf16.mxu1 %v1197_v8 }
  0x44   : > { %1067 = vmatpush3.bf16.msra.mxu0 %v1198_v9  ;;  %1134 = vmatpush3.bf16.msra.mxu1 %v1198_v9 }
  0x45   : > { %1068 = vmatprep.subr.bf16.mxu0 %v1199_v10  ;;  %1127 = vmatprep.subr.bf16.mxu1 %v1199_v10 }
  0x48   : > { %1069 = vmatpush3.bf16.msra.mxu0 %v1200_v13  ;;  %1135 = vmatpush3.bf16.msra.mxu1 %v1200_v13 }
  0x49   : > { %1070 = vmatprep.subr.bf16.mxu0 %v1201_v14  ;;  %1128 = vmatprep.subr.bf16.mxu1 %v1201_v14 }
  0x4c   : > { %1071 = vmatpush3.bf16.msra.mxu0 %v1202_v15  ;;  %1136 = vmatpush3.bf16.msra.mxu1 %v1202_v15 }
  0x4d   : > { %1072 = vmatprep.subr.bf16.mxu0 %v1203_v16  ;;  %1129 = vmatprep.subr.bf16.mxu1 %v1203_v16 }
  0x50   : > { %1073 = vmatpush3.bf16.msra.mxu0 %v1204_v17  ;;  %1137 = vmatpush3.bf16.msra.mxu1 %v1204_v17 }
  0x53   : > { %568 = vmatmul.mubr.bf16.vlgmr.msra.gmra.mrb[0].mxu0 %v1205_v18  ;;  %600 = vmatmul.mubr.bf16.vlgmr.msra.gmra.mrb[0].mxu1 %v1208_v19 }
  0x54   : > { %575 = vmatprep.mubr.bf16.mxu0 %v1211_v20  ;;  %607 = vmatprep.mubr.bf16.mxu1 %v1213_v21 }
  0x5b   : > { %576 = vmatmul.mubr.bf16.gmra.mrb[4].mxu0 %v1215_v22  ;;  %608 = vmatmul.mubr.bf16.gmra.mrb[4].mxu1 %v1216_v23 }
  0x5c   : > { %583 = vmatprep.mubr.bf16.mxu0 %v1217_v24  ;;  %615 = vmatprep.mubr.bf16.mxu1 %v1219_v25 }
  0x63   : > { %584 = vmatmul.mubr.bf16.gmra.mrb[8].mxu0 %v1221_v26  ;;  %616 = vmatmul.mubr.bf16.gmra.mrb[8].mxu1 %v1222_v27 }
  0x64   : > { %591 = vmatprep.mubr.bf16.mxu0 %v1223_v28  ;;  %623 = vmatprep.mubr.bf16.mxu1 %v1225_v29 }
  0x6b   : > { %592 = vmatmul.mubr.bf16.gmra.mrb[12].mxu0 %v1227_v30  ;;  %624 = vmatmul.mubr.bf16.gmra.mrb[12].mxu1 %v1228_v31 }
 0x126   : > { %v1074_v32 = vpop.f32.mrb[0].mxu0  ;;  %v1098_v33 = vpop.f32.mrb[0].mxu1 }
 0x127   : > { %v1075_v34 = vpop.f32.mrb[1].mxu0  ;;  %v1099_v36 = vpop.f32.mrb[1].mxu1 }
 0x128   : > { %v1076_v37 = vadd.f32 %v1075_v34, %v1074_v32  ;;  %v1100_v38 = vadd.f32 %v1099_v36, %v1098_v33  ;;  %v1077_v39 = vpop.f32.mrb[2].mxu0  ;;  %v1101_v40 = vpop.f32.mrb[2].mxu1 }
 0x129   : > { %v1078_v41 = vpop.f32.mrb[3].mxu0  ;;  %v1102_v42 = vpop.f32.mrb[3].mxu1 }
 0x12a   : > { %v690_v43 = vadd.f32 %v1076_v37, %v1448_v35  ;;  %v698_v44 = vadd.f32 %v1100_v38, %v1448_v35  ;;  %v1079_v45 = vadd.f32 %v1078_v41, %v1077_v39  ;;  %v1103_v46 = vadd.f32 %v1102_v42, %v1101_v40 }
 0x12c   : > { %v691_v47 = vadd.f32 %v1079_v45, %v1448_v35  ;;  %v699_v48 = vadd.f32 %v1103_v46, %v1448_v35  ;;  %v706_v49 = vmax.f32 %v690_v43, 0.0  ;;  %v714_v50 = vmax.f32 %v698_v44, 0.0 }
 0x12e   : > { %v707_v51 = vmax.f32 %v691_v47, 0.0  ;;  %v715_v52 = vmax.f32 %v699_v48, 0.0  ;;  %v1080_v53 = vpop.f32.mrb[4].mxu0  ;;  %v1104_v54 = vpop.f32.mrb[4].mxu1 }
 0x12f   : > { %v1081_v55 = vpop.f32.mrb[5].mxu0  ;;  %v1105_v56 = vpop.f32.mrb[5].mxu1 }
 0x130   : > { %v1014_v57 = vpack.c.bf16 %v707_v51, %v706_v49  ;;  %v1034_v58 = vpack.c.bf16 %v715_v52, %v714_v50  ;;  %v1082_v59 = vadd.f32 %v1081_v55, %v1080_v53  ;;  %v1106_v60 = vadd.f32 %v1105_v56, %v1104_v54  ;;  %v1083_v61 = vpop.f32.mrb[6].mxu0  ;;  %v1107_v62 = vpop.f32.mrb[6].mxu1 }
 0x131   : > { %v1084_v63 = vpop.f32.mrb[7].mxu0  ;;  %v1108_v0 = vpop.f32.mrb[7].mxu1 }
 0x132   : > { %1015 = vst [vmem:[%s1458_s4] sm:$0xff] %v1014_v57   ;;  %1054 = vst [vmem:[%s1458_s4 + $0x20] sm:$0xff] %v1034_v58   ;;  %v692_v1 = vadd.f32 %v1082_v59, %v1448_v35  ;;  %v700_v2 = vadd.f32 %v1106_v60, %v1448_v35  ;;  %v1085_v3 = vadd.f32 %v1084_v63, %v1083_v61 }
 0x133   : > { %v1109_v4 = vadd.f32 %v1108_v0, %v1107_v62 }
 0x134   : > { %v693_v5 = vadd.f32 %v1085_v3, %v1448_v35  ;;  %v708_v7 = vmax.f32 %v692_v1, 0.0  ;;  %v716_v8 = vmax.f32 %v700_v2, 0.0 }
 0x135   : > { %v701_v6 = vadd.f32 %v1109_v4, %v1448_v35 }
 0x136   : > { %v709_v9 = vmax.f32 %v693_v5, 0.0  ;;  %v1086_v11 = vpop.f32.mrb[8].mxu0  ;;  %v1110_v12 = vpop.f32.mrb[8].mxu1 }
 0x137   : > { %v717_v10 = vmax.f32 %v701_v6, 0.0  ;;  %v1087_v13 = vpop.f32.mrb[9].mxu0  ;;  %v1111_v14 = vpop.f32.mrb[9].mxu1 }
 0x138   : > { %v1019_v15 = vpack.c.bf16 %v709_v9, %v708_v7  ;;  %v1088_v17 = vadd.f32 %v1087_v13, %v1086_v11  ;;  %v1112_v18 = vadd.f32 %v1111_v14, %v1110_v12  ;;  %v1089_v19 = vpop.f32.mrb[10].mxu0  ;;  %v1113_v20 = vpop.f32.mrb[10].mxu1 }
 0x139   : > { %v1039_v16 = vpack.c.bf16 %v717_v10, %v716_v8  ;;  %v1090_v21 = vpop.f32.mrb[11].mxu0  ;;  %v1114_v22 = vpop.f32.mrb[11].mxu1 }
 0x13a   : > { %1051 = vst [vmem:[%s1458_s4 + $0x8] sm:$0xff] %v1019_v15   ;;  %v694_v23 = vadd.f32 %v1088_v17, %v1448_v35  ;;  %v702_v24 = vadd.f32 %v1112_v18, %v1448_v35  ;;  %v1091_v25 = vadd.f32 %v1090_v21, %v1089_v19  ;;  %v1115_v26 = vadd.f32 %v1114_v22, %v1113_v20 }
 0x13b   : > { %1055 = vst [vmem:[%s1458_s4 + $0x28] sm:$0xff] %v1039_v16  }
 0x13c   : > { %v695_v27 = vadd.f32 %v1091_v25, %v1448_v35  ;;  %v703_v28 = vadd.f32 %v1115_v26, %v1448_v35  ;;  %v710_v29 = vmax.f32 %v694_v23, 0.0  ;;  %v718_v30 = vmax.f32 %v702_v24, 0.0 }
 0x13e   : > { %v711_v31 = vmax.f32 %v695_v27, 0.0  ;;  %v719_v32 = vmax.f32 %v703_v28, 0.0  ;;  %v1092_v33 = vpop.f32.mrb[12].mxu0  ;;  %v1116_v34 = vpop.f32.mrb[12].mxu1 }
 0x13f   : > { %v1093_v36 = vpop.f32.mrb[13].mxu0  ;;  %v1117_v37 = vpop.f32.mrb[13].mxu1 }
 0x140   : > { %v1024_v38 = vpack.c.bf16 %v711_v31, %v710_v29  ;;  %v1044_v39 = vpack.c.bf16 %v719_v32, %v718_v30  ;;  %v1094_v40 = vadd.f32 %v1093_v36, %v1092_v33  ;;  %v1118_v41 = vadd.f32 %v1117_v37, %v1116_v34  ;;  %v1095_v42 = vpop.f32.mrb[14].mxu0  ;;  %v1119_v43 = vpop.f32.mrb[14].mxu1 }
 0x141   : > { %v1096_v44 = vpop.f32.mrb[15].mxu0  ;;  %v1120_v45 = vpop.f32.mrb[15].mxu1 }
 0x142   : > { %1052 = vst [vmem:[%s1458_s4 + $0x10] sm:$0xff] %v1024_v38   ;;  %1056 = vst [vmem:[%s1458_s4 + $0x30] sm:$0xff] %v1044_v39   ;;  %v696_v46 = vadd.f32 %v1094_v40, %v1448_v35  ;;  %v704_v47 = vadd.f32 %v1118_v41, %v1448_v35  ;;  %v1097_v48 = vadd.f32 %v1096_v44, %v1095_v42 }
 0x143   : > { %v1121_v49 = vadd.f32 %v1120_v45, %v1119_v43 }
 0x144   : > { %v697_v50 = vadd.f32 %v1097_v48, %v1448_v35  ;;  %v712_v52 = vmax.f32 %v696_v46, 0.0  ;;  %v720_v53 = vmax.f32 %v704_v47, 0.0 }
 0x145   : > { %v705_v51 = vadd.f32 %v1121_v49, %v1448_v35 }
 0x146   : > { %v713_v54 = vmax.f32 %v697_v50, 0.0 }
 0x147   : > { %v721_v55 = vmax.f32 %v705_v51, 0.0 }
 0x148   : > { %v1029_v56 = vpack.c.bf16 %v713_v54, %v712_v52 }
 0x149   : > { %v1049_v57 = vpack.c.bf16 %v721_v55, %v720_v53 }
 0x14a   : > { %1053 = vst [vmem:[%s1458_s4 + $0x18] sm:$0xff] %v1029_v56  }
 0x14b   : > { %1057 = vst [vmem:[%s1458_s4 + $0x38] sm:$0xff] %v1049_v57  }
 0x14c PF: > { %s14_s16 = sadd.s32 1, %s1299_s16   ;;  %s1507_s12 = smov %s1291_s14 }
 0x14d   : > { %p11_p7 = scmp.ge.s32.totalorder %s14_s16, 8   ;;  %s1508_s13 = smov %s1295_s15 }
 0x14e   : > { %s1509_s14 = smov %s1512_s18  ;;  %s1510_s15 = smov %s1516_s19 }
 0x14f   :  { %13 = sbr.rel (!%p11_p7) target bundleno = 3 (0x3), region = 79 }
 0x156   :  { %832 = vsyncpa [#allocation4], 1 }
 0x157   :  { %834 = vsyncpa [#allocation4 + $0x1], 1 }

</bundles_post_ra>
